<compile_context>
chip_gen: v6e
topology: v6e:2x2x1
jax: 0.10.0
libtpu: 0.0.40
codegen_flags: <defaults>
</compile_context>

<pallas_src>
import math

import jax
import jax.numpy as jnp
from jax.experimental import pallas as pl
from jax.experimental.pallas import tpu as pltpu


def _make_kernel(C, M):
    inv_m = 1.0 / float(M)

    def kernel(w_ref, a_ref, g_ref, b_ref, e1_ref, e2_ref, sel_ref,
               mu_ref, ixz_ref):
        # Fused PE-equivariant linear map: [2C, 3D] x [3D, M] -> [2C, M].
        # Single bf16 MXU pass, f32 accumulation; 0.1*P3 / 0.1*P4 already
        # folded into w_ref by the wrapper.
        x = jnp.dot(w_ref[...], a_ref[...],
                    preferred_element_type=jnp.float32)
        x = jnp.maximum(x, 0.0)                                   # ReLU

        # BatchNorm2d, training mode: per-channel stats over the M positions,
        # one-pass (sum, sum of squares).
        sx = jnp.sum(x, axis=1, keepdims=True)                    # [2C, 1]
        sxx = jnp.sum(x * x, axis=1, keepdims=True)               # [2C, 1]
        mean = sx * inv_m
        var = sxx * inv_m - mean * mean
        scale = g_ref[...] * jax.lax.rsqrt(var + 1e-5)            # [2C, 1]
        shift = b_ref[...] - mean * scale
        xn = x * scale + shift                                    # [2C, M]

        mu = xn[:C, :]                                            # [C, M]
        std = jax.nn.softplus(xn[C:, :]) + 1e-10                  # [C, M]
        mu_ref[...] = mu                                          # lane-dense store

        # Closed-form mean over samples of (log q(z) - log p(z)):
        #   -log std + 0.5 mu^2 + mu std E[eps] + 0.5 (std^2 - 1) E[eps^2]
        e1 = e1_ref[...]
        e2 = e2_ref[...]
        t = (-jnp.log(std) + 0.5 * (mu * mu)
             + (mu * std) * e1 + 0.5 * (std * std - 1.0) * e2)    # [C, M]
        tsum = jnp.sum(t, axis=0, keepdims=True)                  # [1, M]
        # Per-batch segment sum over the M = B*H*W lane axis via one-hot matmul.
        ixz_ref[...] = jnp.dot(tsum, sel_ref[...],
                               preferred_element_type=jnp.float32)  # [1, B]

    return kernel


def layer_eib_2dpe_forward(A_nchw, P1w, P3w, P4w, gamma, beta, eps):
    """A_nchw: [B, input_dim, P1, P2]; eps: [S, B, P1, P2, output_dim].

    Returns (A_output [B, output_dim, P1, P2], I_XZ [B])."""
    B, D, H, W = A_nchw.shape
    C2 = P1w.shape[0]
    C = C2 // 2
    M = B * H * W
    HW = H * W

    A = A_nchw.astype(jnp.float32)

    # ---- wrapper glue (plain JAX; layout + small reductions) ---------------
    # Augmented RHS [3D, M]: rows = (A, mean over P2 bcast, mean over P1 bcast),
    # columns ordered (b, h, w).
    a_rows = jnp.transpose(A, (1, 0, 2, 3))                               # [D,B,H,W]
    a_mw = jnp.broadcast_to(
        jnp.transpose(jnp.mean(A, axis=3), (1, 0, 2))[:, :, :, None],
        (D, B, H, W))                                                     # mean over P2
    a_mh = jnp.broadcast_to(
        jnp.transpose(jnp.mean(A, axis=2), (1, 0, 2))[:, :, None, :],
        (D, B, H, W))                                                     # mean over P1
    a_aug = jnp.concatenate([a_rows, a_mw, a_mh], axis=0).reshape(3 * D, M)

    # Concatenated weight [2C, 3D] with the 0.1 factors folded in.
    w_cat = jnp.concatenate([P1w, 0.1 * P3w, 0.1 * P4w], axis=1)

    # bf16 matmul operands -> single MXU pass (accumulation stays f32).
    a_aug_bf = a_aug.astype(jnp.bfloat16)
    w_cat_bf = w_cat.astype(jnp.bfloat16)

    g2 = gamma.reshape(C2, 1).astype(jnp.float32)
    b2 = beta.reshape(C2, 1).astype(jnp.float32)

    # Sample-axis collapse: only the first two eps moments are needed.
    e1 = jnp.mean(eps, axis=0)                                            # [B,H,W,C]
    e2 = jnp.mean(eps * eps, axis=0)                                      # [B,H,W,C]
    e1_t = jnp.transpose(e1, (3, 0, 1, 2)).reshape(C, M).astype(jnp.float32)
    e2_t = jnp.transpose(e2, (3, 0, 1, 2)).reshape(C, M).astype(jnp.float32)

    # One-hot batch selector [M, B] for the per-batch KL segment sum.
    sel = (jnp.arange(M)[:, None] // HW ==
           jnp.arange(B)[None, :]).astype(jnp.float32)

    kernel = _make_kernel(C, M)

    mu_cm, ixz = pl.pallas_call(
        kernel,
        grid=(1,),
        in_specs=[
            pl.BlockSpec((C2, 3 * D), lambda i: (0, 0)),   # fused weights
            pl.BlockSpec((3 * D, M), lambda i: (0, 0)),    # augmented activations
            pl.BlockSpec((C2, 1), lambda i: (0, 0)),       # gamma
            pl.BlockSpec((C2, 1), lambda i: (0, 0)),       # beta
            pl.BlockSpec((C, M), lambda i: (0, 0)),        # E[eps]
            pl.BlockSpec((C, M), lambda i: (0, 0)),        # E[eps^2]
            pl.BlockSpec((M, B), lambda i: (0, 0)),        # batch one-hot
        ],
        out_specs=(
            pl.BlockSpec((C, M), lambda i: (0, 0)),        # mu (lane-dense)
            pl.BlockSpec((1, B), lambda i: (0, 0)),        # I_XZ per batch
        ),
        out_shape=(
            jax.ShapeDtypeStruct((C, M), jnp.float32),
            jax.ShapeDtypeStruct((1, B), jnp.float32),
        ),
        compiler_params=pltpu.CompilerParams(
            dimension_semantics=("arbitrary",)),
    )(w_cat_bf, a_aug_bf, g2, b2, e1_t, e2_t, sel)

    # [C, B*H*W] -> [B, C, H, W]
    A_out = jnp.transpose(mu_cm.reshape(C, B, H, W), (1, 0, 2, 3))
    return A_out, ixz[0]


def reference_forward(A, P1w, P3w, P4w, gamma, beta, eps):
    """Pure-JAX reference matching the PyTorch forward (same eps, per-sample)."""
    B, D, H, W = A.shape
    C2 = P1w.shape[0]
    C = C2 // 2
    A1 = jnp.einsum('cd,bdhw->bchw', P1w, A, precision='highest')
    A3 = jnp.einsum('cd,bdh->bch', P3w, A.mean(-1), precision='highest')[:, :, :, None]
    A4 = jnp.einsum('cd,bdw->bcw', P4w, A.mean(-2), precision='highest')[:, :, None, :]
    X = jax.nn.relu(A1 + 0.1 * A3 + 0.1 * A4)
    mean = X.mean(axis=(0, 2, 3), keepdims=True)
    var = ((X - mean) ** 2).mean(axis=(0, 2, 3), keepdims=True)
    Xn = (X - mean) / jnp.sqrt(var + 1e-5) * gamma[None, :, None, None] \
        + beta[None, :, None, None]
    mu = Xn[:, :C]                                                  # [B,C,H,W]
    std = jax.nn.softplus(Xn[:, C:]) + 1e-10
    mu_l = jnp.transpose(mu, (0, 2, 3, 1))                          # [B,H,W,C]
    std_l = jnp.transpose(std, (0, 2, 3, 1))
    z = mu_l[None] + std_l[None] * eps
    diff = -jnp.log(std_l)[None] - 0.5 * eps ** 2 + 0.5 * z ** 2
    ixz = diff.sum(axis=(2, 3, 4)).mean(axis=0)                     # [B]
    return mu, ixz


if __name__ == "__main__":
    # Small shapes: batch=2, input_dim=4, output_dim=4, P1=P2=8, sample_size=4
    B, D, C, H, W, S = 2, 4, 4, 8, 8, 4
    C2 = 2 * C

    key = jax.random.PRNGKey(0)
    k1, k2, k3, kA, kE = jax.random.split(key, 5)
    ini = math.sqrt(3.0 / C / 2 / D)   # matches torch init range for P1/P3/P4

    def bf16_repr(x):
        # bf16-representable f32 test data (the kernel matmul runs in bf16).
        return x.astype(jnp.bfloat16).astype(jnp.float32)

    P1w = bf16_repr(jax.random.uniform(k1, (C2, D), jnp.float32, -ini, ini))
    P3w = bf16_repr(jax.random.uniform(k2, (C2, D), jnp.float32, -ini, ini))
    P4w = bf16_repr(jax.random.uniform(k3, (C2, D), jnp.float32, -ini, ini))
    gamma = jnp.ones((C2,), jnp.float32)     # BatchNorm2d affine params at init
    beta = jnp.zeros((C2,), jnp.float32)

    A = bf16_repr(jax.random.normal(kA, (B, D, H, W), jnp.float32))  # NCHW input
    eps = jax.random.normal(kE, (S, B, H, W, C), jnp.float32)        # rsample noise

    fwd = jax.jit(layer_eib_2dpe_forward)
    A_out, I_XZ = fwd(A, P1w, P3w, P4w, gamma, beta, eps)
    jax.block_until_ready((A_out, I_XZ))

    A_ref, I_ref = reference_forward(A, P1w, P3w, P4w, gamma, beta, eps)
    assert A_out.shape == (B, C, H, W) and I_XZ.shape == (B,)
    assert jnp.allclose(A_out, A_ref, atol=5e-3, rtol=5e-3)
    assert jnp.allclose(I_XZ, I_ref, atol=2e-1, rtol=2e-2)
    print("KERNEL_OK")
</pallas_src>

<mosaic_0001>
module attributes {stable_mosaic.version = 11 : i64} {
  func.func @kernel(%arg0: i32, %arg1: memref<8x12xbf16, #tpu.memory_space<vmem>>, %arg2: memref<12x128xbf16, #tpu.memory_space<vmem>>, %arg3: memref<8x1xf32, #tpu.memory_space<vmem>>, %arg4: memref<8x1xf32, #tpu.memory_space<vmem>>, %arg5: memref<4x128xf32, #tpu.memory_space<vmem>>, %arg6: memref<4x128xf32, #tpu.memory_space<vmem>>, %arg7: memref<128x2xf32, #tpu.memory_space<vmem>>, %arg8: memref<4x128xf32, #tpu.memory_space<vmem>>, %arg9: memref<1x2xf32, #tpu.memory_space<vmem>>) attributes {dimension_semantics = [#tpu.dimension_semantics<arbitrary>], iteration_bounds = array<i64: 1>, scalar_prefetch = 0 : i64, scratch_operands = 0 : i64, tpu.core_type = #tpu.core_type<tc>, window_params = [{pipeline_mode = #tpu.pipeline_mode<synchronous>, transform_indices = @transform_0, window_bounds = array<i64: 8, 12>}, {pipeline_mode = #tpu.pipeline_mode<synchronous>, transform_indices = @transform_1, window_bounds = array<i64: 12, 128>}, {pipeline_mode = #tpu.pipeline_mode<synchronous>, transform_indices = @transform_2, window_bounds = array<i64: 8, 1>}, {pipeline_mode = #tpu.pipeline_mode<synchronous>, transform_indices = @transform_3, window_bounds = array<i64: 8, 1>}, {pipeline_mode = #tpu.pipeline_mode<synchronous>, transform_indices = @transform_4, window_bounds = array<i64: 4, 128>}, {pipeline_mode = #tpu.pipeline_mode<synchronous>, transform_indices = @transform_5, window_bounds = array<i64: 4, 128>}, {pipeline_mode = #tpu.pipeline_mode<synchronous>, transform_indices = @transform_6, window_bounds = array<i64: 128, 2>}, {pipeline_mode = #tpu.pipeline_mode<synchronous>, transform_indices = @transform_7, window_bounds = array<i64: 4, 128>}, {pipeline_mode = #tpu.pipeline_mode<synchronous>, transform_indices = @transform_8, window_bounds = array<i64: 1, 2>}]} {
    %c0 = arith.constant 0 : index
    %c0_0 = arith.constant 0 : index
    %0 = vector.load %arg1[%c0, %c0_0] : memref<8x12xbf16, #tpu.memory_space<vmem>>, vector<8x12xbf16>
    %c0_1 = arith.constant 0 : index
    %c0_2 = arith.constant 0 : index
    %1 = vector.load %arg2[%c0_1, %c0_2] : memref<12x128xbf16, #tpu.memory_space<vmem>>, vector<12x128xbf16>
    %cst = arith.constant dense<0.000000e+00> : vector<8x128xf32>
    %2 = tpu.matmul %0, %1, %cst {dimension_numbers = #tpu.dot_dimension_numbers<[1], [0], [0], [1], [0, 0, 1, 1], [], []>} : vector<8x12xbf16>, vector<12x128xbf16>, vector<8x128xf32> -> vector<8x128xf32>
    %cst_3 = arith.constant 0.000000e+00 : f32
    %3 = vector.broadcast %cst_3 : f32 to vector<8x128xf32>
    %4 = arith.maximumf %2, %3 : vector<8x128xf32>
    %cst_4 = arith.constant dense<0.000000e+00> : vector<8xf32>
    %5 = vector.multi_reduction <add>, %4, %cst_4 [1] : vector<8x128xf32> to vector<8xf32>
    %6 = vector.shape_cast %5 : vector<8xf32> to vector<8x1xf32>
    %7 = arith.mulf %4, %4 : vector<8x128xf32>
    %cst_5 = arith.constant dense<0.000000e+00> : vector<8xf32>
    %8 = vector.multi_reduction <add>, %7, %cst_5 [1] : vector<8x128xf32> to vector<8xf32>
    %9 = vector.shape_cast %8 : vector<8xf32> to vector<8x1xf32>
    %cst_6 = arith.constant 7.812500e-03 : f32
    %10 = vector.broadcast %cst_6 : f32 to vector<8x1xf32>
    %11 = arith.mulf %6, %10 : vector<8x1xf32>
    %cst_7 = arith.constant 7.812500e-03 : f32
    %12 = vector.broadcast %cst_7 : f32 to vector<8x1xf32>
    %13 = arith.mulf %9, %12 : vector<8x1xf32>
    %14 = arith.mulf %11, %11 : vector<8x1xf32>
    %15 = arith.subf %13, %14 : vector<8x1xf32>
    %c0_8 = arith.constant 0 : index
    %c0_9 = arith.constant 0 : index
    %16 = vector.load %arg3[%c0_8, %c0_9] : memref<8x1xf32, #tpu.memory_space<vmem>>, vector<8x1xf32>
    %cst_10 = arith.constant 9.99999974E-6 : f32
    %17 = vector.broadcast %cst_10 : f32 to vector<8x1xf32>
    %18 = arith.addf %15, %17 : vector<8x1xf32>
    %19 = math.rsqrt %18 : vector<8x1xf32>
    %20 = arith.mulf %16, %19 : vector<8x1xf32>
    %c0_11 = arith.constant 0 : index
    %c0_12 = arith.constant 0 : index
    %21 = vector.load %arg4[%c0_11, %c0_12] : memref<8x1xf32, #tpu.memory_space<vmem>>, vector<8x1xf32>
    %22 = arith.mulf %11, %20 : vector<8x1xf32>
    %23 = arith.subf %21, %22 : vector<8x1xf32>
    %24 = vector.broadcast %20 : vector<8x1xf32> to vector<8x128xf32>
    %25 = arith.mulf %4, %24 : vector<8x128xf32>
    %26 = vector.broadcast %23 : vector<8x1xf32> to vector<8x128xf32>
    %27 = arith.addf %25, %26 : vector<8x128xf32>
    %28 = vector.extract_strided_slice %27 {offsets = [0, 0], sizes = [4, 128], strides = [1, 1]} : vector<8x128xf32> to vector<4x128xf32>
    %29 = vector.extract_strided_slice %27 {offsets = [4, 0], sizes = [4, 128], strides = [1, 1]} : vector<8x128xf32> to vector<4x128xf32>
    %cst_13 = arith.constant 0.000000e+00 : f32
    %30 = vector.broadcast %cst_13 : f32 to vector<4x128xf32>
    %31 = arith.maximumf %29, %30 : vector<4x128xf32>
    %32 = vector.broadcast %cst_13 : f32 to vector<4x128xf32>
    %33 = arith.subf %29, %32 : vector<4x128xf32>
    %34 = arith.cmpf one, %33, %33 : vector<4x128xf32>
    %35 = vector.broadcast %cst_13 : f32 to vector<4x128xf32>
    %36 = arith.addf %29, %35 : vector<4x128xf32>
    %37 = math.absf %33 : vector<4x128xf32>
    %cst_14 = arith.constant 0.000000e+00 : f32
    %38 = vector.broadcast %cst_14 : f32 to vector<4x128xf32>
    %39 = arith.subf %38, %37 : vector<4x128xf32>
    %40 = math.exp %39 : vector<4x128xf32>
    %41 = math.log1p %40 : vector<4x128xf32>
    %42 = arith.addf %31, %41 : vector<4x128xf32>
    %43 = arith.select %34, %36, %42 : vector<4x128xi1>, vector<4x128xf32>
    %cst_15 = arith.constant 1.000000e-10 : f32
    %44 = vector.broadcast %cst_15 : f32 to vector<4x128xf32>
    %45 = arith.addf %43, %44 : vector<4x128xf32>
    %c0_16 = arith.constant 0 : index
    %c0_17 = arith.constant 0 : index
    %46 = vector.load %arg8[%c0_16, %c0_17] : memref<4x128xf32, #tpu.memory_space<vmem>>, vector<4x128xf32>
    tpu.vector_store %arg8[%c0_16, %c0_17], %28 {strides = array<i32>} : memref<4x128xf32, #tpu.memory_space<vmem>>, vector<4x128xf32>,
    %c0_18 = arith.constant 0 : index
    %c0_19 = arith.constant 0 : index
    %47 = vector.load %arg5[%c0_18, %c0_19] : memref<4x128xf32, #tpu.memory_space<vmem>>, vector<4x128xf32>
    %c0_20 = arith.constant 0 : index
    %c0_21 = arith.constant 0 : index
    %48 = vector.load %arg6[%c0_20, %c0_21] : memref<4x128xf32, #tpu.memory_space<vmem>>, vector<4x128xf32>
    %49 = math.log %45 : vector<4x128xf32>
    %cst_22 = arith.constant 0.000000e+00 : f32
    %50 = vector.broadcast %cst_22 : f32 to vector<4x128xf32>
    %51 = arith.subf %50, %49 : vector<4x128xf32>
    %52 = arith.mulf %28, %28 : vector<4x128xf32>
    %cst_23 = arith.constant 5.000000e-01 : f32
    %53 = vector.broadcast %cst_23 : f32 to vector<4x128xf32>
    %54 = arith.mulf %53, %52 : vector<4x128xf32>
    %55 = arith.addf %51, %54 : vector<4x128xf32>
    %56 = arith.mulf %28, %45 : vector<4x128xf32>
    %57 = arith.mulf %56, %47 : vector<4x128xf32>
    %58 = arith.addf %55, %57 : vector<4x128xf32>
    %59 = arith.mulf %45, %45 : vector<4x128xf32>
    %cst_24 = arith.constant 1.000000e+00 : f32
    %60 = vector.broadcast %cst_24 : f32 to vector<4x128xf32>
    %61 = arith.subf %59, %60 : vector<4x128xf32>
    %cst_25 = arith.constant 5.000000e-01 : f32
    %62 = vector.broadcast %cst_25 : f32 to vector<4x128xf32>
    %63 = arith.mulf %62, %61 : vector<4x128xf32>
    %64 = arith.mulf %63, %48 : vector<4x128xf32>
    %65 = arith.addf %58, %64 : vector<4x128xf32>
    %cst_26 = arith.constant dense<0.000000e+00> : vector<128xf32>
    %66 = vector.multi_reduction <add>, %65, %cst_26 [0] : vector<4x128xf32> to vector<128xf32>
    %67 = vector.shape_cast %66 : vector<128xf32> to vector<1x128xf32>
    %c0_27 = arith.constant 0 : index
    %c0_28 = arith.constant 0 : index
    %68 = vector.load %arg7[%c0_27, %c0_28] : memref<128x2xf32, #tpu.memory_space<vmem>>, vector<128x2xf32>
    %cst_29 = arith.constant dense<0.000000e+00> : vector<1x2xf32>
    %69 = tpu.matmul %67, %68, %cst_29 {dimension_numbers = #tpu.dot_dimension_numbers<[1], [0], [0], [1], [0, 0, 1, 1], [], []>} : vector<1x128xf32>, vector<128x2xf32>, vector<1x2xf32> -> vector<1x2xf32>
    %c0_30 = arith.constant 0 : index
    %c0_31 = arith.constant 0 : index
    %70 = vector.load %arg9[%c0_30, %c0_31] : memref<1x2xf32, #tpu.memory_space<vmem>>, vector<1x2xf32>
    tpu.vector_store %arg9[%c0_30, %c0_31], %69 {strides = array<i32>} : memref<1x2xf32, #tpu.memory_space<vmem>>, vector<1x2xf32>,
    return
  }
  func.func @transform_0(%arg0: i32) -> (i32, i32) {
    %c0_i32 = arith.constant 0 : i32
    %c0_i32_0 = arith.constant 0 : i32
    %c0_i32_1 = arith.constant 0 : i32
    return %c0_i32, %c0_i32_0 : i32, i32
  }
  func.func @transform_1(%arg0: i32) -> (i32, i32) {
    %c0_i32 = arith.constant 0 : i32
    %c0_i32_0 = arith.constant 0 : i32
    %c0_i32_1 = arith.constant 0 : i32
    return %c0_i32, %c0_i32_0 : i32, i32
  }
  func.func @transform_2(%arg0: i32) -> (i32, i32) {
    %c0_i32 = arith.constant 0 : i32
    %c0_i32_0 = arith.constant 0 : i32
    %c0_i32_1 = arith.constant 0 : i32
    return %c0_i32, %c0_i32_0 : i32, i32
  }
  func.func @transform_3(%arg0: i32) -> (i32, i32) {
    %c0_i32 = arith.constant 0 : i32
    %c0_i32_0 = arith.constant 0 : i32
    %c0_i32_1 = arith.constant 0 : i32
    return %c0_i32, %c0_i32_0 : i32, i32
  }
  func.func @transform_4(%arg0: i32) -> (i32, i32) {
    %c0_i32 = arith.constant 0 : i32
    %c0_i32_0 = arith.constant 0 : i32
    %c0_i32_1 = arith.constant 0 : i32
    return %c0_i32, %c0_i32_0 : i32, i32
  }
  func.func @transform_5(%arg0: i32) -> (i32, i32) {
    %c0_i32 = arith.constant 0 : i32
    %c0_i32_0 = arith.constant 0 : i32
    %c0_i32_1 = arith.constant 0 : i32
    return %c0_i32, %c0_i32_0 : i32, i32
  }
  func.func @transform_6(%arg0: i32) -> (i32, i32) {
    %c0_i32 = arith.constant 0 : i32
    %c0_i32_0 = arith.constant 0 : i32
    %c0_i32_1 = arith.constant 0 : i32
    return %c0_i32, %c0_i32_0 : i32, i32
  }
  func.func @transform_7(%arg0: i32) -> (i32, i32) {
    %c0_i32 = arith.constant 0 : i32
    %c0_i32_0 = arith.constant 0 : i32
    %c0_i32_1 = arith.constant 0 : i32
    return %c0_i32, %c0_i32_0 : i32, i32
  }
  func.func @transform_8(%arg0: i32) -> (i32, i32) {
    %c0_i32 = arith.constant 0 : i32
    %c0_i32_0 = arith.constant 0 : i32
    %c0_i32_1 = arith.constant 0 : i32
    return %c0_i32, %c0_i32_0 : i32, i32
  }
}

</mosaic_0001>

<bundles_post_ra>
// kernel: layer_eib_2dpe_forward.1
= control target key start
LH: loop header
LB: loop body
LE: loop exit
PB: predicated region body
PF: predicated region fallthrough
CT: control target
= control target key end

     0   :  { %vm42_vm0 = vcmask 1045504   ;;  %v380_v0 = vmov 0.0   ;;  %vm381_vm1 = vmmov 0   ;;  %s526_s0 = inlined_call_operand.vmem [shape: bf16[8,12], index: 0, kind: input, shape index: {}]   ;;  %s527_s1 = inlined_call_operand.vmem [shape: bf16[12,128], index: 1, kind: input, shape index: {}]   ;;  %s528_s2 = inlined_call_operand.vmem [shape: f32[8,1], index: 2, kind: input, shape index: {}]   ;;  %s529_s3 = inlined_call_operand.vmem [shape: f32[8,1], index: 3, kind: input, shape index: {}]   ;;  %s530_s4 = inlined_call_operand.vmem [shape: f32[4,128], index: 4, kind: input, shape index: {}]   ;;  %s531_s5 = inlined_call_operand.vmem [shape: f32[4,128], index: 5, kind: input, shape index: {}]   ;;  %s532_s6 = inlined_call_operand.vmem [shape: f32[128,2], index: 6, kind: input, shape index: {}]   ;;  %s533_s7 = inlined_call_operand.vmem [shape: f32[4,128], index: 7, kind: output, shape index: {0}]   ;;  %s534_s8 = inlined_call_operand.hbm [shape: f32[1,2], index: 8, kind: output, shape index: {1}]  }
   0x1   :  { %302 = vmatprep.subr.bf16.mxu0 %v380_v0  ;;  %v349_v1 = vld [vmem:[%s527_s1] sm:$0x3f]   ;;  %308 = vmatprep.subr.mxu1 %v380_v0 }
   0x2   :  { %304 = vmatprep.mubr.msk.bf16.mxu0 %vm381_vm1, %v380_v0  ;;  %340 = vmatprep.mubr.msk.f32.mxu1 %vm381_vm1, %v380_v0 }
   0x3   :  { %14 = vsyncpa [#allocation3], 0  ;;  %v44_v2 = vsel %vm42_vm0, %v349_v1, 0  ;;  %v30_v3 = vld [vmem:[%s526_s0] sm:$0xf]  ;;  %vm38_vm2 = vcmask 97280  }
   0x4   :  { %303 = vmatpush3.bf16.msra.mxu0 %v44_v2  ;;  %v382_v10 = vmov 0   ;;  %v96_v18 = vld [vmem:[%s528_s2] sm:$0xff]  ;;  %v189_v24 = vld [vmem:[%s532_s6 + $0x78] sm:$0xff]  ;;  %v188_v25 = vld [vmem:[%s532_s6 + $0x70] sm:$0xff]  ;;  %vm166_vm5 = vcmask 1043456   ;;  %vm260_vm6 = vcmask 8192  }
   0x5   :  { %347 = vset.pattern.permute.xlu1 %v382_v10  ;;  %348 = vset.pattern.permute.xlu0 %v382_v10  ;;  %v100_v21 = vld [vmem:[%s529_s3] sm:$0xff]  ;;  %v187_v26 = vld [vmem:[%s532_s6 + $0x68] sm:$0xff]  ;;  %v185_v28 = vld [vmem:[%s532_s6 + $0x58] sm:$0xff] }
   0x6   :  { %309 = vmatpush3.msra.mxu1 %v189_v24  ;;  %v186_v27 = vld [vmem:[%s532_s6 + $0x60] sm:$0xff]  ;;  %v184_v29 = vld [vmem:[%s532_s6 + $0x50] sm:$0xff]  ;;  %v183_v30 = vld [vmem:[%s532_s6 + $0x48] sm:$0xff] }
   0x7   :  { %305 = vmatmul.mubr.msk.bf16.vlgmr.msra.gmra.mxu0 %vm38_vm2, %v30_v3  ;;  %310 = vmatprep.subr.mxu1 %v380_v0  ;;  %v182_v31 = vld [vmem:[%s532_s6 + $0x40] sm:$0xff]  ;;  %v181_v32 = vld [vmem:[%s532_s6 + $0x38] sm:$0xff]  ;;  %v180_v33 = vld [vmem:[%s532_s6 + $0x30] sm:$0xff] }
   0x8   :  { %311 = vmatpush3.msra.mxu1 %v188_v25  ;;  %v179_v34 = vld [vmem:[%s532_s6 + $0x28] sm:$0xff]  ;;  %v178_v35 = vld [vmem:[%s532_s6 + $0x20] sm:$0xff]  ;;  %v177_v36 = vld [vmem:[%s532_s6 + $0x18] sm:$0xff] }
   0x9   :  { %312 = vmatprep.subr.mxu1 %v380_v0  ;;  %v176_v37 = vld [vmem:[%s532_s6 + $0x10] sm:$0xff]  ;;  %v175_v38 = vld [vmem:[%s532_s6 + $0x8] sm:$0xff]  ;;  %v174_v39 = vld [vmem:[%s532_s6] sm:$0xff] }
   0xa   :  { %313 = vmatpush3.msra.mxu1 %v187_v26 }
   0xb   :  { %314 = vmatprep.subr.mxu1 %v380_v0 }
   0xc   :  { %315 = vmatpush3.msra.mxu1 %v186_v27 }
   0xd   :  { %316 = vmatprep.subr.mxu1 %v380_v0 }
   0xe   :  { %317 = vmatpush3.msra.mxu1 %v185_v28 }
   0xf   :  { %318 = vmatprep.subr.mxu1 %v380_v0 }
  0x10   :  { %319 = vmatpush3.msra.mxu1 %v184_v29 }
  0x11   :  { %320 = vmatprep.subr.mxu1 %v380_v0 }
  0x12   :  { %321 = vmatpush3.msra.mxu1 %v183_v30 }
  0x13   :  { %322 = vmatprep.subr.mxu1 %v380_v0 }
  0x14   :  { %323 = vmatpush3.msra.mxu1 %v182_v31 }
  0x15   :  { %324 = vmatprep.subr.mxu1 %v380_v0 }
  0x16   :  { %325 = vmatpush3.msra.mxu1 %v181_v32 }
  0x17   :  { %326 = vmatprep.subr.mxu1 %v380_v0 }
  0x18   :  { %327 = vmatpush3.msra.mxu1 %v180_v33 }
  0x19   :  { %328 = vmatprep.subr.mxu1 %v380_v0 }
  0x1a   :  { %329 = vmatpush3.msra.mxu1 %v179_v34 }
  0x1b   :  { %330 = vmatprep.subr.mxu1 %v380_v0 }
  0x1c   :  { %331 = vmatpush3.msra.mxu1 %v178_v35 }
  0x1d   :  { %332 = vmatprep.subr.mxu1 %v380_v0 }
  0x1e   :  { %333 = vmatpush3.msra.mxu1 %v177_v36 }
  0x1f   :  { %334 = vmatprep.subr.mxu1 %v380_v0 }
  0x20   :  { %335 = vmatpush3.msra.mxu1 %v176_v37 }
  0x21   :  { %336 = vmatprep.subr.mxu1 %v380_v0 }
  0x22   :  { %337 = vmatpush3.msra.mxu1 %v175_v38 }
  0x23   :  { %338 = vmatprep.subr.mxu1 %v380_v0  ;;  %v135_v0 = vld [vmem:[%s530_s4] sm:$0xf]  ;;  %s383_s4 = smov [#allocation2]  }
  0x24   :  { %339 = vmatpush3.msra.mxu1 %v174_v39 }
  0xc7   :  { %v80_v4 = vpop.f32.mrf.mxu0 }
  0xc8   :  { %v439_v5 = vmax.f32 %v80_v4, 0.0  ;;  %v136_v4 = vld [vmem:[%s531_s5] sm:$0xf]  ;;  %s270_s5 = sshll.u32 %s383_s4, 4  ;;  %s271_s5 = int_to_ptr.vmem [resolvable:$true] %s270_s5 }
  0xc9   :  { %v306_v6 = vpop.f32.mrf.mxu0  ;;  %v159_v10 = vrot.slane %v136_v4, 4  ;;  %s358_s19 = scalar_lea.vmem %s271_s5, 16  ;;  %s362_s20 = scalar_lea.vmem %s271_s5, 32 }
  0xca   :  { %87 = vadd.xlane.f32.xlu0 %v439_v5  ;;  %v89_v8 = vmul.f32 %v439_v5, %v439_v5  ;;  %p359_p0 = scmp.ne.s32.totalorder %s271_s5, %s358_s19  ;;  %p363_p1 = scmp.lt.s32.totalorder %s271_s5, %s271_s5 }
  0xcb   :  { %v83_v7 = vpop.f32.mrf.mxu0  ;;  %p364_p2 = scmp.lt.s32.totalorder %s362_s20, %s358_s19 }
  0xcd   :  { %v307_v9 = vpop.f32.mrf.mxu0  ;;  %p365_p3 = por %p364_p2, %p363_p1 }
  0xce   :  { %90 = vadd.xlane.f32.xlu0 %v89_v8 }
  0xcf   :  { %p366_p4 = pnand %p365_p3, %p359_p0 }
 0x153   :  { %v88_v11 = vpop.xlane.xlu0 %87 }
 0x154   :  { %v92_v12 = vmul.f32 0.0078125, %v88_v11 }
 0x156   :  { %v94_v14 = vmul.f32 %v92_v12, %v92_v12 }
 0x157   :  { %v91_v13 = vpop.xlane.xlu0 %90 }
 0x158   :  { %v93_v15 = vmul.f32 0.0078125, %v91_v13 }
 0x15a   :  { %v95_v16 = vsub.f32 %v93_v15, %v94_v14 }
 0x15c   :  { %v97_v17 = vadd.f32 1e-05, %v95_v16 }
 0x15e   :  { %350 = vrsqrt.f32 %v97_v17 }
 0x16b   :  { %v351_v19 = vpop.eup %350 }
 0x16c   :  { %v99_v20 = vmul.f32 %v351_v19, %v96_v18 }
 0x16e   :  { %105 = vperm.xlu1 %347, %v99_v20   ;;  %v101_v22 = vmul.f32 %v99_v20, %v92_v12 }
 0x170   :  { %v102_v23 = vsub.f32 %v100_v21, %v101_v22 }
 0x172   :  { %111 = vperm.xlu1 %347, %v102_v23  }
 0x1e9   :  { %v106_v40 = vpop.permute.xlu1 %105 }
 0x1ea   :  { %v108_v41 = vmul.f32 %v106_v40, %v439_v5 }
 0x1ed   :  { %v112_v42 = vpop.permute.xlu1 %111 }
 0x1ee   :  { %v114_v43 = vadd.f32 %v112_v42, %v108_v41 }
 0x1f0   :  { %v118_v44 = vand.u32 2147483647, %v114_v43  ;;  %134 = vst [vmem:[%s533_s7] sm:$0xf] %v114_v43  ;;  %v115_v55 = vmax.f32 %v114_v43, 0.0  ;;  %vm116_vm4 = vcmp.ne.f32.partialorder %v114_v43, %v114_v43  ;;  %v140_v61 = vmul.f32 %v114_v43, %v114_v43 }
 0x1f2   :  { %v119_v45 = vsub.f32 0.0, %v118_v44  ;;  %v141_v1 = vmul.f32 0.5, %v140_v61 }
 0x1f4   :  { %v120_v46 = vmul.f32 1.442695, %v119_v45  ;;  %v143_v8 = vrot.slane %v141_v1, 4 }
 0x1f6   :  { %352 = vpow2.f32 %v120_v46 }
 0x203   :  { %v353_v47 = vpop.eup %352 }
 0x204   :  { %v122_v48 = vadd.f32 1.0, %v353_v47  ;;  %v125_v49 = vmul.f32 -0.5, %v353_v47  ;;  %v128_v51 = vand.u32 2147483647, %v353_v47 }
 0x206   :  { %354 = vlog2.f32 %v122_v48  ;;  %v126_v50 = vadd.f32 1.0, %v125_v49  ;;  %vm129_vm3 = vcmp.lt.f32.partialorder %v128_v51, 0.0004427343 }
 0x208   :  { %v127_v54 = vmul.f32 %v353_v47, %v126_v50 }
 0x213   :  { %v355_v52 = vpop.eup %354 }
 0x214   :  { %v124_v53 = vmul.f32 0.6931472, %v355_v52 }
 0x216   :  { %v130_v56 = vsel %vm129_vm3, %v127_v54, %v124_v53 }
 0x217   :  { %v131_v57 = vadd.f32 %v130_v56, %v115_v55 }
 0x219   :  { %v132_v58 = vsel %vm116_vm4, %v114_v43, %v131_v57 }
 0x21a   :  { %v133_v59 = vadd.f32 1e-10, %v132_v58 }
 0x21c   :  { %356 = vlog2.f32 %v133_v59  ;;  %v147_v60 = vrot.slane %v133_v59, 4  ;;  %v155_v62 = vmul.f32 %v133_v59, %v133_v59 }
 0x21e   :  { %v149_v63 = vmul.f32 %v147_v60, %v114_v43  ;;  %v282_v2 = vadd.f32 -1.0, %v155_v62 }
 0x220   :  { %v150_v6 = vmul.f32 %v149_v63, %v135_v0  ;;  %v157_v9 = vmul.f32 0.5, %v282_v2 }
 0x222   :  { %v152_v12 = vrot.slane %v150_v6, 4  ;;  %v161_v14 = vmul.f32 %v159_v10, %v157_v9 }
 0x229   :  { %v357_v3 = vpop.eup %356 }
 0x22a   :  { %v138_v5 = vmul.f32 0.6931472, %v357_v3 }
 0x22c   :  { %v139_v7 = vsub.f32 0.0, %v138_v5 }
 0x22e   :  { %v145_v11 = vadd.f32 %v143_v8, %v139_v7 }
 0x230   :  { %v154_v13 = vadd.f32 %v152_v12, %v145_v11 }
 0x232   :  { %v162_v15 = vadd.f32 %v161_v14, %v154_v13 }
 0x234   :  { %v164_v16 = vrot.slane %v162_v15, 4 }
 0x236   :  { %v167_v17 = vsel %vm166_vm5, %v164_v16, 0.0 }
 0x237   :  { %v168_v18 = vrot.slane %v167_v17, 4 }
 0x239   :  { %v169_v19 = vadd.f32 %v168_v18, %v167_v17 }
 0x23b   :  { %v170_v20 = vrot.slane %v169_v19, 2 }
 0x23d   :  { %v171_v21 = vadd.f32 %v170_v20, %v169_v19 }
 0x23f   :  { %v172_v22 = vrot.slane %v171_v21, 1 }
 0x241   :  { %v173_v23 = vadd.f32 %v172_v22, %v171_v21 }
 0x243   :  { %341 = vmatmul.mubr.f32.vlgmr.msra.gmra.mxu1 %v173_v23 }
 0x303   :  { %v256_v24 = vpop.f32.mrf.mxu1 }
 0x304   :  { %261 = vst.msk [vmem:[#allocation2] sm:$0x1] %vm260_vm6, %v256_v24 }
 0x305   :  { %v342_v25 = vpop.f32.mrf.mxu1 }
 0x306   :  { %369 = shalt.err (!%p366_p4)
}
 0x307   :  { %273 = dma.vmem_to_hbm [thread:$0]  %s271_s5, 16, %s534_s8, [#allocation3]  }
 0x308   :  { %378 = dma.done.wait [#allocation3], 16  }
 0x309   :  { %379 = vsyncadd [#allocation3], 4294967280 }
 0x30a   :  { %279 = vsyncpa [#allocation3], 1 }

</bundles_post_ra>
